<compile_context>
chip_gen: v6e
topology: v6e:2x2x1
jax: 0.10.0
libtpu: 0.0.40
codegen_flags: <defaults>
</compile_context>

<pallas_src>
import jax
import jax.numpy as jnp
from jax import lax
from jax.experimental import pallas as pl
from jax.experimental.pallas import tpu as pltpu


# --------------------------------------------------------------------------
# Kernel 1: LSTM recurrence (single invocation, whole tensors in VMEM).
# --------------------------------------------------------------------------
def lstm_recurrence_kernel(seq_ref, wih_ref, whh_ref, b_ref, h_all_ref, gx_ref):
    """seq_ref   : (T, Bp, E)  time-major input, batch padded to multiple of 8
       wih_ref   : (E, 4H)     input->gates weight (pre-transposed, order i,f,g,o)
       whh_ref   : (H, 4H)     hidden->gates weight (pre-transposed)
       b_ref     : (1, 4H)     combined bias (b_ih + b_hh)
       h_all_ref : (T, Bp, H)  OUTPUT: every hidden state
       gx_ref    : (T, Bp, 4H) scratch: precomputed input-gate pre-activations
    """
    T, Bp, E = seq_ref.shape
    H = whh_ref.shape[0]

    # ---- hoisted input projection: one batched MXU matmul over all T steps ----
    # Bp is a multiple of 8, so (T, Bp, E) -> (T*Bp, E) is layout-preserving.
    x_all = seq_ref[...].reshape(T * Bp, E)
    gx_ref[...] = (jnp.dot(x_all, wih_ref[...], preferred_element_type=jnp.float32)
                   + b_ref[...]).reshape(T, Bp, 4 * H)

    w_hh = whh_ref[...]  # load once, reused every step

    # Lane mask selecting the cell-gate (tanh) lanes [2H:3H); hoisted out of
    # the loop (JAX does not CSE broadcasts).
    lane = lax.broadcasted_iota(jnp.int32, (Bp, 4 * H), 1)
    g_mask = (lane >= 2 * H) & (lane < 3 * H)

    def step(t, carry):
        h, c = carry
        # Serial critical path per step: one (Bp,H)x(H,4H) matmul + VPU/EUP.
        gates = gx_ref[t] + jnp.dot(h, w_hh, preferred_element_type=jnp.float32)
        # One sigmoid + one tanh over the full (Bp,4H) vreg, then a VPU select,
        # instead of 4 sliced transcendentals (EUP has a single port).
        act = jnp.where(g_mask, jnp.tanh(gates), jax.nn.sigmoid(gates))
        i_g = act[:, 0 * H:1 * H]
        f_g = act[:, 1 * H:2 * H]
        g_g = act[:, 2 * H:3 * H]
        o_g = act[:, 3 * H:4 * H]
        c = f_g * c + i_g * g_g
        h = o_g * jnp.tanh(c)
        h_all_ref[t] = h
        return (h, c)

    h0 = jnp.zeros((Bp, H), jnp.float32)
    c0 = jnp.zeros((Bp, H), jnp.float32)
    # Partial unroll: scheduler visibility without exploding live ranges for
    # long caption lengths.
    lax.fori_loop(0, T, step, (h0, c0), unroll=min(T, 8))


# --------------------------------------------------------------------------
# Kernel 2: output projection, grid-tiled over (T-chunks, V-tiles).
# --------------------------------------------------------------------------
def output_projection_kernel(h_ref, wout_ref, bout_ref, o_ref):
    """h_ref    : (tc, Bp, H)   chunk of hidden states
       wout_ref : (H, tv)       tile of output weight
       bout_ref : (1, tv)       tile of output bias
       o_ref    : (tc, Bp, tv)  logits tile (lane-dense)
    """
    tc, Bp, H = h_ref.shape
    tv = wout_ref.shape[1]
    h_flat = h_ref[...].reshape(tc * Bp, H)
    logits = (jnp.dot(h_flat, wout_ref[...], preferred_element_type=jnp.float32)
              + bout_ref[...])
    o_ref[...] = logits.reshape(tc, Bp, tv).astype(o_ref.dtype)


# --------------------------------------------------------------------------
# Wrapper.
# --------------------------------------------------------------------------
def _vmem_limit(nbytes):
    # 2x headroom for buffering + 4 MiB slack, clamped to sane bounds.
    return int(min(max(2 * nbytes + (4 << 20), 16 << 20), 100 << 20))


def _largest_divisor_at_most(n, cap):
    for d in range(min(n, cap), 0, -1):
        if n % d == 0:
            return d
    return 1


def decoder_rnn_forward(params, image_features, image_captions):
    """Replicates DecoderRNN.forward.

    image_features : (B, E) float32
    image_captions : (B, Tc) int32
    returns        : (B, Tc, V) float32
    """
    emb_table = params["embedding"]        # (V, E)
    w_ih = params["w_ih"]                  # (E, 4H)
    w_hh = params["w_hh"]                  # (H, 4H)
    b = params["b"]                        # (1, 4H)
    w_out = params["w_out"]                # (H, V)
    b_out = params["b_out"]                # (1, V)

    # ---- glue (plain JAX): embedding gather + prepend image feature ----
    # TODO(synk): fuse this gather/concat/transpose/pad into kernel 1 via
    # PrefetchScalarGridSpec to avoid the (B,T,E) HBM materialization.
    caps = image_captions[:, :-1]                                        # (B, Tc-1)
    embeds = jnp.take(emb_table, caps, axis=0)                           # (B, Tc-1, E)
    seq = jnp.concatenate([image_features[:, None, :], embeds], axis=1)  # (B, T, E)

    B, T, E = seq.shape
    H = w_hh.shape[0]
    V = w_out.shape[1]

    # Pad batch to a full f32 sublane tile (multiple of 8).
    Bp = ((B + 7) // 8) * 8
    seq_tm = jnp.transpose(seq, (1, 0, 2))                               # (T, B, E)
    if Bp != B:
        seq_tm = jnp.pad(seq_tm, ((0, 0), (0, Bp - B), (0, 0)))          # (T, Bp, E)

    # ---- kernel 1: recurrence -> all hidden states ----
    rec_bytes = 4 * (T * Bp * E + E * 4 * H + H * 4 * H + 4 * H
                     + T * Bp * H + T * Bp * 4 * H)
    h_all = pl.pallas_call(
        lstm_recurrence_kernel,
        out_shape=jax.ShapeDtypeStruct((T, Bp, H), jnp.float32),
        scratch_shapes=[pltpu.VMEM((T, Bp, 4 * H), jnp.float32)],
        compiler_params=pltpu.CompilerParams(
            vmem_limit_bytes=_vmem_limit(rec_bytes)),
    )(seq_tm, w_ih, w_hh, b)

    # ---- kernel 2: tiled output projection (lane-dense logits writeback) ----
    t_chunk = _largest_divisor_at_most(T, 16)
    v_tile = 512 if (V % 512 == 0) else V
    proj_block_bytes = 4 * (t_chunk * Bp * H + H * v_tile + v_tile
                            + t_chunk * Bp * v_tile)
    logits_tm = pl.pallas_call(
        output_projection_kernel,
        out_shape=jax.ShapeDtypeStruct((T, Bp, V), jnp.float32),
        grid=(T // t_chunk, V // v_tile),
        in_specs=[
            pl.BlockSpec((t_chunk, Bp, H), lambda ti, vi: (ti, 0, 0)),
            pl.BlockSpec((H, v_tile), lambda ti, vi: (0, vi)),
            pl.BlockSpec((1, v_tile), lambda ti, vi: (0, vi)),
        ],
        out_specs=pl.BlockSpec((t_chunk, Bp, v_tile), lambda ti, vi: (ti, 0, vi)),
        compiler_params=pltpu.CompilerParams(
            dimension_semantics=("parallel", "parallel"),
            vmem_limit_bytes=_vmem_limit(2 * proj_block_bytes)),
    )(h_all, w_out, b_out)

    # Back to batch-first, drop batch padding.
    return jnp.transpose(logits_tm, (1, 0, 2))[:B]


# --------------------------------------------------------------------------
# Pure-JAX reference (sanity check).
# --------------------------------------------------------------------------
def reference_forward(params, image_features, image_captions):
    emb_table = params["embedding"]
    caps = image_captions[:, :-1]
    embeds = jnp.take(emb_table, caps, axis=0)
    seq = jnp.concatenate([image_features[:, None, :], embeds], axis=1)
    B, T, E = seq.shape
    H = params["w_hh"].shape[0]

    def step(carry, x_t):
        h, c = carry
        gates = x_t @ params["w_ih"] + h @ params["w_hh"] + params["b"][0]
        i = jax.nn.sigmoid(gates[:, 0 * H:1 * H])
        f = jax.nn.sigmoid(gates[:, 1 * H:2 * H])
        g = jnp.tanh(gates[:, 2 * H:3 * H])
        o = jax.nn.sigmoid(gates[:, 3 * H:4 * H])
        c = f * c + i * g
        h = o * jnp.tanh(c)
        return (h, c), h @ params["w_out"] + params["b_out"][0]

    init = (jnp.zeros((B, H), jnp.float32), jnp.zeros((B, H), jnp.float32))
    _, outs = jax.lax.scan(step, init, jnp.transpose(seq, (1, 0, 2)))
    return jnp.transpose(outs, (1, 0, 2))


if __name__ == "__main__":
    # Small, deterministic config consistent with the module's __init__.
    embedding_size = 32
    hidden_size = 32
    vocabulary_size = 128
    batch_size = 2
    caption_len = 8   # seq length = (caption_len - 1) caption steps + 1 image step

    key = jax.random.PRNGKey(0)
    k = jax.random.split(key, 8)

    params = {
        "embedding": jax.random.normal(k[0], (vocabulary_size, embedding_size), jnp.float32) * 0.1,
        # LSTM weights stored pre-transposed: (in, 4H) / (H, 4H); gate order i,f,g,o.
        "w_ih": jax.random.normal(k[1], (embedding_size, 4 * hidden_size), jnp.float32) * 0.1,
        "w_hh": jax.random.normal(k[2], (hidden_size, 4 * hidden_size), jnp.float32) * 0.1,
        # combined bias = b_ih + b_hh
        "b": jax.random.normal(k[3], (1, 4 * hidden_size), jnp.float32) * 0.1,
        "w_out": jax.random.normal(k[4], (hidden_size, vocabulary_size), jnp.float32) * 0.1,
        "b_out": jax.random.normal(k[5], (1, vocabulary_size), jnp.float32) * 0.1,
    }

    image_features = jax.random.normal(k[6], (batch_size, embedding_size), jnp.float32)
    image_captions = jax.random.randint(k[7], (batch_size, caption_len), 0, vocabulary_size,
                                        dtype=jnp.int32)

    out = decoder_rnn_forward(params, image_features, image_captions)
    out = jax.block_until_ready(out)

    ref = jax.block_until_ready(reference_forward(params, image_features, image_captions))
    assert out.shape == (batch_size, caption_len, vocabulary_size), out.shape
    assert jnp.allclose(out, ref, atol=1e-4, rtol=1e-4), "mismatch vs reference"

    print("KERNEL_OK")
</pallas_src>

<mosaic_0001>
module attributes {stable_mosaic.version = 11 : i64} {
  func.func @lstm_recurrence_kernel(%arg0: memref<8x8x32xf32, #tpu.memory_space<vmem>>, %arg1: memref<32x128xf32, #tpu.memory_space<vmem>>, %arg2: memref<32x128xf32, #tpu.memory_space<vmem>>, %arg3: memref<1x128xf32, #tpu.memory_space<vmem>>, %arg4: memref<8x8x32xf32, #tpu.memory_space<vmem>>, %arg5: memref<8x8x128xf32, #tpu.memory_space<vmem>>) attributes {dimension_semantics = [], scalar_prefetch = 0 : i64, scratch_operands = 1 : i64, tpu.core_type = #tpu.core_type<tc>} {
    %c0 = arith.constant 0 : index
    %c0_0 = arith.constant 0 : index
    %c0_1 = arith.constant 0 : index
    %0 = vector.load %arg0[%c0, %c0_0, %c0_1] : memref<8x8x32xf32, #tpu.memory_space<vmem>>, vector<8x8x32xf32>
    %1 = vector.shape_cast %0 : vector<8x8x32xf32> to vector<64x32xf32>
    %c0_2 = arith.constant 0 : index
    %c0_3 = arith.constant 0 : index
    %2 = vector.load %arg1[%c0_2, %c0_3] : memref<32x128xf32, #tpu.memory_space<vmem>>, vector<32x128xf32>
    %cst = arith.constant dense<0.000000e+00> : vector<64x128xf32>
    %3 = tpu.matmul %1, %2, %cst {dimension_numbers = #tpu.dot_dimension_numbers<[1], [0], [0], [1], [0, 0, 1, 1], [], []>} : vector<64x32xf32>, vector<32x128xf32>, vector<64x128xf32> -> vector<64x128xf32>
    %c0_4 = arith.constant 0 : index
    %c0_5 = arith.constant 0 : index
    %4 = vector.load %arg3[%c0_4, %c0_5] : memref<1x128xf32, #tpu.memory_space<vmem>>, vector<1x128xf32>
    %5 = vector.broadcast %4 : vector<1x128xf32> to vector<64x128xf32>
    %6 = arith.addf %3, %5 : vector<64x128xf32>
    %7 = vector.shape_cast %6 : vector<64x128xf32> to vector<8x8x128xf32>
    %c0_6 = arith.constant 0 : index
    %c0_7 = arith.constant 0 : index
    %c0_8 = arith.constant 0 : index
    %8 = vector.load %arg5[%c0_6, %c0_7, %c0_8] : memref<8x8x128xf32, #tpu.memory_space<vmem>>, vector<8x8x128xf32>
    tpu.vector_store %arg5[%c0_6, %c0_7, %c0_8], %7 {strides = array<i32>} : memref<8x8x128xf32, #tpu.memory_space<vmem>>, vector<8x8x128xf32>,
    %c0_9 = arith.constant 0 : index
    %c0_10 = arith.constant 0 : index
    %9 = vector.load %arg2[%c0_9, %c0_10] : memref<32x128xf32, #tpu.memory_space<vmem>>, vector<32x128xf32>
    %10 = tpu.iota {dimensions = array<i32: 1>} : vector<8x128xi32>
    %c64_i32 = arith.constant 64 : i32
    %11 = vector.broadcast %c64_i32 : i32 to vector<8x128xi32>
    %12 = arith.cmpi sge, %10, %11 : vector<8x128xi32>
    %c96_i32 = arith.constant 96 : i32
    %13 = vector.broadcast %c96_i32 : i32 to vector<8x128xi32>
    %14 = arith.cmpi slt, %10, %13 : vector<8x128xi32>
    %15 = arith.andi %12, %14 : vector<8x128xi1>
    %cst_11 = arith.constant 0.000000e+00 : f32
    %16 = vector.broadcast %cst_11 : f32 to vector<8x32xf32>
    %cst_12 = arith.constant 0.000000e+00 : f32
    %17 = vector.broadcast %cst_12 : f32 to vector<8x32xf32>
    %c0_i32 = arith.constant 0 : i32
    %18 = arith.index_cast %c0_i32 : i32 to index
    %c0_13 = arith.constant 0 : index
    %c0_14 = arith.constant 0 : index
    %19 = vector.load %arg5[%18, %c0_13, %c0_14] : memref<8x8x128xf32, #tpu.memory_space<vmem>>, vector<1x8x128xf32>
    %20 = vector.shape_cast %19 : vector<1x8x128xf32> to vector<8x128xf32>
    %cst_15 = arith.constant dense<0.000000e+00> : vector<8x128xf32>
    %21 = tpu.matmul %16, %9, %cst_15 {dimension_numbers = #tpu.dot_dimension_numbers<[1], [0], [0], [1], [0, 0, 1, 1], [], []>} : vector<8x32xf32>, vector<32x128xf32>, vector<8x128xf32> -> vector<8x128xf32>
    %22 = arith.addf %20, %21 : vector<8x128xf32>
    %23 = math.tanh %22 : vector<8x128xf32>
    %24 = arith.negf %22 : vector<8x128xf32>
    %25 = math.exp %24 : vector<8x128xf32>
    %cst_16 = arith.constant 1.000000e+00 : f32
    %26 = vector.broadcast %cst_16 : f32 to vector<8x128xf32>
    %27 = arith.addf %26, %25 : vector<8x128xf32>
    %28 = arith.divf %26, %27 : vector<8x128xf32>
    %29 = arith.select %15, %23, %28 : vector<8x128xi1>, vector<8x128xf32>
    %30 = vector.extract_strided_slice %29 {offsets = [0, 0], sizes = [8, 32], strides = [1, 1]} : vector<8x128xf32> to vector<8x32xf32>
    %31 = vector.extract_strided_slice %29 {offsets = [0, 32], sizes = [8, 32], strides = [1, 1]} : vector<8x128xf32> to vector<8x32xf32>
    %32 = vector.extract_strided_slice %29 {offsets = [0, 64], sizes = [8, 32], strides = [1, 1]} : vector<8x128xf32> to vector<8x32xf32>
    %33 = vector.extract_strided_slice %29 {offsets = [0, 96], sizes = [8, 32], strides = [1, 1]} : vector<8x128xf32> to vector<8x32xf32>
    %34 = arith.mulf %31, %17 : vector<8x32xf32>
    %35 = arith.mulf %30, %32 : vector<8x32xf32>
    %36 = arith.addf %34, %35 : vector<8x32xf32>
    %37 = math.tanh %36 : vector<8x32xf32>
    %38 = arith.mulf %33, %37 : vector<8x32xf32>
    %39 = arith.index_cast %c0_i32 : i32 to index
    %c0_17 = arith.constant 0 : index
    %c0_18 = arith.constant 0 : index
    %40 = vector.load %arg4[%39, %c0_17, %c0_18] : memref<8x8x32xf32, #tpu.memory_space<vmem>>, vector<1x8x32xf32>
    %41 = vector.shape_cast %40 : vector<1x8x32xf32> to vector<8x32xf32>
    %42 = vector.shape_cast %38 : vector<8x32xf32> to vector<1x8x32xf32>
    tpu.vector_store %arg4[%39, %c0_17, %c0_18], %42 {strides = array<i32>} : memref<8x8x32xf32, #tpu.memory_space<vmem>>, vector<1x8x32xf32>,
    %c1_i32 = arith.constant 1 : i32
    %43 = arith.index_cast %c1_i32 : i32 to index
    %c0_19 = arith.constant 0 : index
    %c0_20 = arith.constant 0 : index
    %44 = vector.load %arg5[%43, %c0_19, %c0_20] : memref<8x8x128xf32, #tpu.memory_space<vmem>>, vector<1x8x128xf32>
    %45 = vector.shape_cast %44 : vector<1x8x128xf32> to vector<8x128xf32>
    %cst_21 = arith.constant dense<0.000000e+00> : vector<8x128xf32>
    %46 = tpu.matmul %38, %9, %cst_21 {dimension_numbers = #tpu.dot_dimension_numbers<[1], [0], [0], [1], [0, 0, 1, 1], [], []>} : vector<8x32xf32>, vector<32x128xf32>, vector<8x128xf32> -> vector<8x128xf32>
    %47 = arith.addf %45, %46 : vector<8x128xf32>
    %48 = math.tanh %47 : vector<8x128xf32>
    %49 = arith.negf %47 : vector<8x128xf32>
    %50 = math.exp %49 : vector<8x128xf32>
    %cst_22 = arith.constant 1.000000e+00 : f32
    %51 = vector.broadcast %cst_22 : f32 to vector<8x128xf32>
    %52 = arith.addf %51, %50 : vector<8x128xf32>
    %53 = arith.divf %51, %52 : vector<8x128xf32>
    %54 = arith.select %15, %48, %53 : vector<8x128xi1>, vector<8x128xf32>
    %55 = vector.extract_strided_slice %54 {offsets = [0, 0], sizes = [8, 32], strides = [1, 1]} : vector<8x128xf32> to vector<8x32xf32>
    %56 = vector.extract_strided_slice %54 {offsets = [0, 32], sizes = [8, 32], strides = [1, 1]} : vector<8x128xf32> to vector<8x32xf32>
    %57 = vector.extract_strided_slice %54 {offsets = [0, 64], sizes = [8, 32], strides = [1, 1]} : vector<8x128xf32> to vector<8x32xf32>
    %58 = vector.extract_strided_slice %54 {offsets = [0, 96], sizes = [8, 32], strides = [1, 1]} : vector<8x128xf32> to vector<8x32xf32>
    %59 = arith.mulf %56, %36 : vector<8x32xf32>
    %60 = arith.mulf %55, %57 : vector<8x32xf32>
    %61 = arith.addf %59, %60 : vector<8x32xf32>
    %62 = math.tanh %61 : vector<8x32xf32>
    %63 = arith.mulf %58, %62 : vector<8x32xf32>
    %64 = arith.index_cast %c1_i32 : i32 to index
    %c0_23 = arith.constant 0 : index
    %c0_24 = arith.constant 0 : index
    %65 = vector.load %arg4[%64, %c0_23, %c0_24] : memref<8x8x32xf32, #tpu.memory_space<vmem>>, vector<1x8x32xf32>
    %66 = vector.shape_cast %65 : vector<1x8x32xf32> to vector<8x32xf32>
    %67 = vector.shape_cast %63 : vector<8x32xf32> to vector<1x8x32xf32>
    tpu.vector_store %arg4[%64, %c0_23, %c0_24], %67 {strides = array<i32>} : memref<8x8x32xf32, #tpu.memory_space<vmem>>, vector<1x8x32xf32>,
    %c2_i32 = arith.constant 2 : i32
    %68 = arith.index_cast %c2_i32 : i32 to index
    %c0_25 = arith.constant 0 : index
    %c0_26 = arith.constant 0 : index
    %69 = vector.load %arg5[%68, %c0_25, %c0_26] : memref<8x8x128xf32, #tpu.memory_space<vmem>>, vector<1x8x128xf32>
    %70 = vector.shape_cast %69 : vector<1x8x128xf32> to vector<8x128xf32>
    %cst_27 = arith.constant dense<0.000000e+00> : vector<8x128xf32>
    %71 = tpu.matmul %63, %9, %cst_27 {dimension_numbers = #tpu.dot_dimension_numbers<[1], [0], [0], [1], [0, 0, 1, 1], [], []>} : vector<8x32xf32>, vector<32x128xf32>, vector<8x128xf32> -> vector<8x128xf32>
    %72 = arith.addf %70, %71 : vector<8x128xf32>
    %73 = math.tanh %72 : vector<8x128xf32>
    %74 = arith.negf %72 : vector<8x128xf32>
    %75 = math.exp %74 : vector<8x128xf32>
    %cst_28 = arith.constant 1.000000e+00 : f32
    %76 = vector.broadcast %cst_28 : f32 to vector<8x128xf32>
    %77 = arith.addf %76, %75 : vector<8x128xf32>
    %78 = arith.divf %76, %77 : vector<8x128xf32>
    %79 = arith.select %15, %73, %78 : vector<8x128xi1>, vector<8x128xf32>
    %80 = vector.extract_strided_slice %79 {offsets = [0, 0], sizes = [8, 32], strides = [1, 1]} : vector<8x128xf32> to vector<8x32xf32>
    %81 = vector.extract_strided_slice %79 {offsets = [0, 32], sizes = [8, 32], strides = [1, 1]} : vector<8x128xf32> to vector<8x32xf32>
    %82 = vector.extract_strided_slice %79 {offsets = [0, 64], sizes = [8, 32], strides = [1, 1]} : vector<8x128xf32> to vector<8x32xf32>
    %83 = vector.extract_strided_slice %79 {offsets = [0, 96], sizes = [8, 32], strides = [1, 1]} : vector<8x128xf32> to vector<8x32xf32>
    %84 = arith.mulf %81, %61 : vector<8x32xf32>
    %85 = arith.mulf %80, %82 : vector<8x32xf32>
    %86 = arith.addf %84, %85 : vector<8x32xf32>
    %87 = math.tanh %86 : vector<8x32xf32>
    %88 = arith.mulf %83, %87 : vector<8x32xf32>
    %89 = arith.index_cast %c2_i32 : i32 to index
    %c0_29 = arith.constant 0 : index
    %c0_30 = arith.constant 0 : index
    %90 = vector.load %arg4[%89, %c0_29, %c0_30] : memref<8x8x32xf32, #tpu.memory_space<vmem>>, vector<1x8x32xf32>
    %91 = vector.shape_cast %90 : vector<1x8x32xf32> to vector<8x32xf32>
    %92 = vector.shape_cast %88 : vector<8x32xf32> to vector<1x8x32xf32>
    tpu.vector_store %arg4[%89, %c0_29, %c0_30], %92 {strides = array<i32>} : memref<8x8x32xf32, #tpu.memory_space<vmem>>, vector<1x8x32xf32>,
    %c3_i32 = arith.constant 3 : i32
    %93 = arith.index_cast %c3_i32 : i32 to index
    %c0_31 = arith.constant 0 : index
    %c0_32 = arith.constant 0 : index
    %94 = vector.load %arg5[%93, %c0_31, %c0_32] : memref<8x8x128xf32, #tpu.memory_space<vmem>>, vector<1x8x128xf32>
    %95 = vector.shape_cast %94 : vector<1x8x128xf32> to vector<8x128xf32>
    %cst_33 = arith.constant dense<0.000000e+00> : vector<8x128xf32>
    %96 = tpu.matmul %88, %9, %cst_33 {dimension_numbers = #tpu.dot_dimension_numbers<[1], [0], [0], [1], [0, 0, 1, 1], [], []>} : vector<8x32xf32>, vector<32x128xf32>, vector<8x128xf32> -> vector<8x128xf32>
    %97 = arith.addf %95, %96 : vector<8x128xf32>
    %98 = math.tanh %97 : vector<8x128xf32>
    %99 = arith.negf %97 : vector<8x128xf32>
    %100 = math.exp %99 : vector<8x128xf32>
    %cst_34 = arith.constant 1.000000e+00 : f32
    %101 = vector.broadcast %cst_34 : f32 to vector<8x128xf32>
    %102 = arith.addf %101, %100 : vector<8x128xf32>
    %103 = arith.divf %101, %102 : vector<8x128xf32>
    %104 = arith.select %15, %98, %103 : vector<8x128xi1>, vector<8x128xf32>
    %105 = vector.extract_strided_slice %104 {offsets = [0, 0], sizes = [8, 32], strides = [1, 1]} : vector<8x128xf32> to vector<8x32xf32>
    %106 = vector.extract_strided_slice %104 {offsets = [0, 32], sizes = [8, 32], strides = [1, 1]} : vector<8x128xf32> to vector<8x32xf32>
    %107 = vector.extract_strided_slice %104 {offsets = [0, 64], sizes = [8, 32], strides = [1, 1]} : vector<8x128xf32> to vector<8x32xf32>
    %108 = vector.extract_strided_slice %104 {offsets = [0, 96], sizes = [8, 32], strides = [1, 1]} : vector<8x128xf32> to vector<8x32xf32>
    %109 = arith.mulf %106, %86 : vector<8x32xf32>
    %110 = arith.mulf %105, %107 : vector<8x32xf32>
    %111 = arith.addf %109, %110 : vector<8x32xf32>
    %112 = math.tanh %111 : vector<8x32xf32>
    %113 = arith.mulf %108, %112 : vector<8x32xf32>
    %114 = arith.index_cast %c3_i32 : i32 to index
    %c0_35 = arith.constant 0 : index
    %c0_36 = arith.constant 0 : index
    %115 = vector.load %arg4[%114, %c0_35, %c0_36] : memref<8x8x32xf32, #tpu.memory_space<vmem>>, vector<1x8x32xf32>
    %116 = vector.shape_cast %115 : vector<1x8x32xf32> to vector<8x32xf32>
    %117 = vector.shape_cast %113 : vector<8x32xf32> to vector<1x8x32xf32>
    tpu.vector_store %arg4[%114, %c0_35, %c0_36], %117 {strides = array<i32>} : memref<8x8x32xf32, #tpu.memory_space<vmem>>, vector<1x8x32xf32>,
    %c4_i32 = arith.constant 4 : i32
    %118 = arith.index_cast %c4_i32 : i32 to index
    %c0_37 = arith.constant 0 : index
    %c0_38 = arith.constant 0 : index
    %119 = vector.load %arg5[%118, %c0_37, %c0_38] : memref<8x8x128xf32, #tpu.memory_space<vmem>>, vector<1x8x128xf32>
    %120 = vector.shape_cast %119 : vector<1x8x128xf32> to vector<8x128xf32>
    %cst_39 = arith.constant dense<0.000000e+00> : vector<8x128xf32>
    %121 = tpu.matmul %113, %9, %cst_39 {dimension_numbers = #tpu.dot_dimension_numbers<[1], [0], [0], [1], [0, 0, 1, 1], [], []>} : vector<8x32xf32>, vector<32x128xf32>, vector<8x128xf32> -> vector<8x128xf32>
    %122 = arith.addf %120, %121 : vector<8x128xf32>
    %123 = math.tanh %122 : vector<8x128xf32>
    %124 = arith.negf %122 : vector<8x128xf32>
    %125 = math.exp %124 : vector<8x128xf32>
    %cst_40 = arith.constant 1.000000e+00 : f32
    %126 = vector.broadcast %cst_40 : f32 to vector<8x128xf32>
    %127 = arith.addf %126, %125 : vector<8x128xf32>
    %128 = arith.divf %126, %127 : vector<8x128xf32>
    %129 = arith.select %15, %123, %128 : vector<8x128xi1>, vector<8x128xf32>
    %130 = vector.extract_strided_slice %129 {offsets = [0, 0], sizes = [8, 32], strides = [1, 1]} : vector<8x128xf32> to vector<8x32xf32>
    %131 = vector.extract_strided_slice %129 {offsets = [0, 32], sizes = [8, 32], strides = [1, 1]} : vector<8x128xf32> to vector<8x32xf32>
    %132 = vector.extract_strided_slice %129 {offsets = [0, 64], sizes = [8, 32], strides = [1, 1]} : vector<8x128xf32> to vector<8x32xf32>
    %133 = vector.extract_strided_slice %129 {offsets = [0, 96], sizes = [8, 32], strides = [1, 1]} : vector<8x128xf32> to vector<8x32xf32>
    %134 = arith.mulf %131, %111 : vector<8x32xf32>
    %135 = arith.mulf %130, %132 : vector<8x32xf32>
    %136 = arith.addf %134, %135 : vector<8x32xf32>
    %137 = math.tanh %136 : vector<8x32xf32>
    %138 = arith.mulf %133, %137 : vector<8x32xf32>
    %139 = arith.index_cast %c4_i32 : i32 to index
    %c0_41 = arith.constant 0 : index
    %c0_42 = arith.constant 0 : index
    %140 = vector.load %arg4[%139, %c0_41, %c0_42] : memref<8x8x32xf32, #tpu.memory_space<vmem>>, vector<1x8x32xf32>
    %141 = vector.shape_cast %140 : vector<1x8x32xf32> to vector<8x32xf32>
    %142 = vector.shape_cast %138 : vector<8x32xf32> to vector<1x8x32xf32>
    tpu.vector_store %arg4[%139, %c0_41, %c0_42], %142 {strides = array<i32>} : memref<8x8x32xf32, #tpu.memory_space<vmem>>, vector<1x8x32xf32>,
    %c5_i32 = arith.constant 5 : i32
    %143 = arith.index_cast %c5_i32 : i32 to index
    %c0_43 = arith.constant 0 : index
    %c0_44 = arith.constant 0 : index
    %144 = vector.load %arg5[%143, %c0_43, %c0_44] : memref<8x8x128xf32, #tpu.memory_space<vmem>>, vector<1x8x128xf32>
    %145 = vector.shape_cast %144 : vector<1x8x128xf32> to vector<8x128xf32>
    %cst_45 = arith.constant dense<0.000000e+00> : vector<8x128xf32>
    %146 = tpu.matmul %138, %9, %cst_45 {dimension_numbers = #tpu.dot_dimension_numbers<[1], [0], [0], [1], [0, 0, 1, 1], [], []>} : vector<8x32xf32>, vector<32x128xf32>, vector<8x128xf32> -> vector<8x128xf32>
    %147 = arith.addf %145, %146 : vector<8x128xf32>
    %148 = math.tanh %147 : vector<8x128xf32>
    %149 = arith.negf %147 : vector<8x128xf32>
    %150 = math.exp %149 : vector<8x128xf32>
    %cst_46 = arith.constant 1.000000e+00 : f32
    %151 = vector.broadcast %cst_46 : f32 to vector<8x128xf32>
    %152 = arith.addf %151, %150 : vector<8x128xf32>
    %153 = arith.divf %151, %152 : vector<8x128xf32>
    %154 = arith.select %15, %148, %153 : vector<8x128xi1>, vector<8x128xf32>
    %155 = vector.extract_strided_slice %154 {offsets = [0, 0], sizes = [8, 32], strides = [1, 1]} : vector<8x128xf32> to vector<8x32xf32>
    %156 = vector.extract_strided_slice %154 {offsets = [0, 32], sizes = [8, 32], strides = [1, 1]} : vector<8x128xf32> to vector<8x32xf32>
    %157 = vector.extract_strided_slice %154 {offsets = [0, 64], sizes = [8, 32], strides = [1, 1]} : vector<8x128xf32> to vector<8x32xf32>
    %158 = vector.extract_strided_slice %154 {offsets = [0, 96], sizes = [8, 32], strides = [1, 1]} : vector<8x128xf32> to vector<8x32xf32>
    %159 = arith.mulf %156, %136 : vector<8x32xf32>
    %160 = arith.mulf %155, %157 : vector<8x32xf32>
    %161 = arith.addf %159, %160 : vector<8x32xf32>
    %162 = math.tanh %161 : vector<8x32xf32>
    %163 = arith.mulf %158, %162 : vector<8x32xf32>
    %164 = arith.index_cast %c5_i32 : i32 to index
    %c0_47 = arith.constant 0 : index
    %c0_48 = arith.constant 0 : index
    %165 = vector.load %arg4[%164, %c0_47, %c0_48] : memref<8x8x32xf32, #tpu.memory_space<vmem>>, vector<1x8x32xf32>
    %166 = vector.shape_cast %165 : vector<1x8x32xf32> to vector<8x32xf32>
    %167 = vector.shape_cast %163 : vector<8x32xf32> to vector<1x8x32xf32>
    tpu.vector_store %arg4[%164, %c0_47, %c0_48], %167 {strides = array<i32>} : memref<8x8x32xf32, #tpu.memory_space<vmem>>, vector<1x8x32xf32>,
    %c6_i32 = arith.constant 6 : i32
    %168 = arith.index_cast %c6_i32 : i32 to index
    %c0_49 = arith.constant 0 : index
    %c0_50 = arith.constant 0 : index
    %169 = vector.load %arg5[%168, %c0_49, %c0_50] : memref<8x8x128xf32, #tpu.memory_space<vmem>>, vector<1x8x128xf32>
    %170 = vector.shape_cast %169 : vector<1x8x128xf32> to vector<8x128xf32>
    %cst_51 = arith.constant dense<0.000000e+00> : vector<8x128xf32>
    %171 = tpu.matmul %163, %9, %cst_51 {dimension_numbers = #tpu.dot_dimension_numbers<[1], [0], [0], [1], [0, 0, 1, 1], [], []>} : vector<8x32xf32>, vector<32x128xf32>, vector<8x128xf32> -> vector<8x128xf32>
    %172 = arith.addf %170, %171 : vector<8x128xf32>
    %173 = math.tanh %172 : vector<8x128xf32>
    %174 = arith.negf %172 : vector<8x128xf32>
    %175 = math.exp %174 : vector<8x128xf32>
    %cst_52 = arith.constant 1.000000e+00 : f32
    %176 = vector.broadcast %cst_52 : f32 to vector<8x128xf32>
    %177 = arith.addf %176, %175 : vector<8x128xf32>
    %178 = arith.divf %176, %177 : vector<8x128xf32>
    %179 = arith.select %15, %173, %178 : vector<8x128xi1>, vector<8x128xf32>
    %180 = vector.extract_strided_slice %179 {offsets = [0, 0], sizes = [8, 32], strides = [1, 1]} : vector<8x128xf32> to vector<8x32xf32>
    %181 = vector.extract_strided_slice %179 {offsets = [0, 32], sizes = [8, 32], strides = [1, 1]} : vector<8x128xf32> to vector<8x32xf32>
    %182 = vector.extract_strided_slice %179 {offsets = [0, 64], sizes = [8, 32], strides = [1, 1]} : vector<8x128xf32> to vector<8x32xf32>
    %183 = vector.extract_strided_slice %179 {offsets = [0, 96], sizes = [8, 32], strides = [1, 1]} : vector<8x128xf32> to vector<8x32xf32>
    %184 = arith.mulf %181, %161 : vector<8x32xf32>
    %185 = arith.mulf %180, %182 : vector<8x32xf32>
    %186 = arith.addf %184, %185 : vector<8x32xf32>
    %187 = math.tanh %186 : vector<8x32xf32>
    %188 = arith.mulf %183, %187 : vector<8x32xf32>
    %189 = arith.index_cast %c6_i32 : i32 to index
    %c0_53 = arith.constant 0 : index
    %c0_54 = arith.constant 0 : index
    %190 = vector.load %arg4[%189, %c0_53, %c0_54] : memref<8x8x32xf32, #tpu.memory_space<vmem>>, vector<1x8x32xf32>
    %191 = vector.shape_cast %190 : vector<1x8x32xf32> to vector<8x32xf32>
    %192 = vector.shape_cast %188 : vector<8x32xf32> to vector<1x8x32xf32>
    tpu.vector_store %arg4[%189, %c0_53, %c0_54], %192 {strides = array<i32>} : memref<8x8x32xf32, #tpu.memory_space<vmem>>, vector<1x8x32xf32>,
    %c7_i32 = arith.constant 7 : i32
    %193 = arith.index_cast %c7_i32 : i32 to index
    %c0_55 = arith.constant 0 : index
    %c0_56 = arith.constant 0 : index
    %194 = vector.load %arg5[%193, %c0_55, %c0_56] : memref<8x8x128xf32, #tpu.memory_space<vmem>>, vector<1x8x128xf32>
    %195 = vector.shape_cast %194 : vector<1x8x128xf32> to vector<8x128xf32>
    %cst_57 = arith.constant dense<0.000000e+00> : vector<8x128xf32>
    %196 = tpu.matmul %188, %9, %cst_57 {dimension_numbers = #tpu.dot_dimension_numbers<[1], [0], [0], [1], [0, 0, 1, 1], [], []>} : vector<8x32xf32>, vector<32x128xf32>, vector<8x128xf32> -> vector<8x128xf32>
    %197 = arith.addf %195, %196 : vector<8x128xf32>
    %198 = math.tanh %197 : vector<8x128xf32>
    %199 = arith.negf %197 : vector<8x128xf32>
    %200 = math.exp %199 : vector<8x128xf32>
    %cst_58 = arith.constant 1.000000e+00 : f32
    %201 = vector.broadcast %cst_58 : f32 to vector<8x128xf32>
    %202 = arith.addf %201, %200 : vector<8x128xf32>
    %203 = arith.divf %201, %202 : vector<8x128xf32>
    %204 = arith.select %15, %198, %203 : vector<8x128xi1>, vector<8x128xf32>
    %205 = vector.extract_strided_slice %204 {offsets = [0, 0], sizes = [8, 32], strides = [1, 1]} : vector<8x128xf32> to vector<8x32xf32>
    %206 = vector.extract_strided_slice %204 {offsets = [0, 32], sizes = [8, 32], strides = [1, 1]} : vector<8x128xf32> to vector<8x32xf32>
    %207 = vector.extract_strided_slice %204 {offsets = [0, 64], sizes = [8, 32], strides = [1, 1]} : vector<8x128xf32> to vector<8x32xf32>
    %208 = vector.extract_strided_slice %204 {offsets = [0, 96], sizes = [8, 32], strides = [1, 1]} : vector<8x128xf32> to vector<8x32xf32>
    %209 = arith.mulf %206, %186 : vector<8x32xf32>
    %210 = arith.mulf %205, %207 : vector<8x32xf32>
    %211 = arith.addf %209, %210 : vector<8x32xf32>
    %212 = math.tanh %211 : vector<8x32xf32>
    %213 = arith.mulf %208, %212 : vector<8x32xf32>
    %214 = arith.index_cast %c7_i32 : i32 to index
    %c0_59 = arith.constant 0 : index
    %c0_60 = arith.constant 0 : index
    %215 = vector.load %arg4[%214, %c0_59, %c0_60] : memref<8x8x32xf32, #tpu.memory_space<vmem>>, vector<1x8x32xf32>
    %216 = vector.shape_cast %215 : vector<1x8x32xf32> to vector<8x32xf32>
    %217 = vector.shape_cast %213 : vector<8x32xf32> to vector<1x8x32xf32>
    tpu.vector_store %arg4[%214, %c0_59, %c0_60], %217 {strides = array<i32>} : memref<8x8x32xf32, #tpu.memory_space<vmem>>, vector<1x8x32xf32>,
    %c8_i32 = arith.constant 8 : i32
    return
  }
}

</mosaic_0001>

<bundles_post_ra>
// kernel: tpu_custom_call.1
= control target key start
LH: loop header
LB: loop body
LE: loop exit
PB: predicated region body
PF: predicated region fallthrough
CT: control target
= control target key end

     0   :  { %9 = vsyncpa [#allocation4], 0  ;;  %s1682_s0 = inlined_call_operand.hbm [shape: f32[8,8,32], index: 0, kind: input, shape index: {}]   ;;  %s1683_s1 = inlined_call_operand.hbm [shape: f32[32,128], index: 1, kind: input, shape index: {}]   ;;  %s1684_s2 = inlined_call_operand.hbm [shape: f32[32,128], index: 2, kind: input, shape index: {}]   ;;  %s1685_s3 = inlined_call_operand.vmem [shape: f32[1,128], index: 3, kind: input, shape index: {}]   ;;  %s1686_s4 = inlined_call_operand.hbm [shape: f32[8,8,32], index: 4, kind: output, shape index: {}]  }
   0x1   :  { %10 = vsyncpa [#allocation7], 0 }
   0x2   :  { %11 = vsyncpa [#allocation5], 0  ;;  %s1434_s15 = smov [#allocation6]   ;;  %s1435_s17 = smov [#allocation3]  }
   0x3   :  { %s29_s16 = sshll.u32 %s1434_s15, 4  ;;  %s17_s18 = sshll.u32 %s1435_s17, 4  ;;  %s30_s16 = int_to_ptr.vmem [resolvable:$true] %s29_s16  ;;  %s18_s18 = int_to_ptr.vmem [resolvable:$true] %s17_s18 }
   0x4   :  { %s1356_s19 = scalar_lea.vmem %s30_s16, 512  ;;  %p1361_p1 = scmp.lt.s32.totalorder %s30_s16, %s30_s16 }
   0x5   :  { %p1357_p0 = scmp.ne.s32.totalorder %s30_s16, %s1356_s19  ;;  %p1362_p2 = scmp.lt.s32.totalorder %s1356_s19, %s1356_s19 }
   0x7   :  { %p1363_p3 = por %p1362_p2, %p1361_p1 }
   0x9   :  { %p1364_p4 = pnand %p1363_p3, %p1357_p0 }
   0xb   :  { %1367 = shalt.err (!%p1364_p4)
}
   0xc   :  { %s1436_s20 = smov 128   ;;  %s1437_s21 = smov 8  }
   0xd   :  { %35 = dma.hbm_to_vmem [thread:$0]  %s1683_s1, 512, %s30_s16, [#allocation7], %s1436_s20, %s1436_s20, %s1437_s21  }
   0xe   :  { %s1376_s24 = scalar_lea.vmem %s18_s18, 1024  ;;  %p1381_p6 = scmp.lt.s32.totalorder %s18_s18, %s18_s18 }
   0xf   :  { %p1377_p5 = scmp.ne.s32.totalorder %s18_s18, %s1376_s24  ;;  %p1382_p7 = scmp.lt.s32.totalorder %s1376_s24, %s1376_s24 }
  0x11   :  { %p1383_p8 = por %p1382_p7, %p1381_p6 }
  0x13   :  { %p1384_p9 = pnand %p1383_p8, %p1377_p5 }
  0x15   :  { %1387 = shalt.err (!%p1384_p9)
}
  0x16   :  { %23 = dma.hbm_to_vmem [thread:$0]  %s1682_s0, 1024, %s18_s18, [#allocation4], %s1436_s20, %s1436_s20, %s1437_s21  }
  0x17   :  { %s1438_s27 = smov [#allocation8]  }
  0x18   :  { %s41_s28 = sshll.u32 %s1438_s27, 4  ;;  %s42_s28 = int_to_ptr.vmem [resolvable:$true] %s41_s28 }
  0x19   :  { %s1396_s29 = scalar_lea.vmem %s42_s28, 512  ;;  %p1401_p11 = scmp.lt.s32.totalorder %s42_s28, %s42_s28 }
  0x1a   :  { %p1397_p10 = scmp.ne.s32.totalorder %s42_s28, %s1396_s29  ;;  %p1402_p12 = scmp.lt.s32.totalorder %s1396_s29, %s1396_s29 }
  0x1c   :  { %p1403_p13 = por %p1402_p12, %p1401_p11 }
  0x1e   :  { %p1404_p0 = pnand %p1403_p13, %p1397_p10 }
  0x20   :  { %1407 = shalt.err (!%p1404_p0)
}
  0x21   :  { %47 = dma.hbm_to_vmem [thread:$0]  %s1684_s2, 512, %s42_s28, [#allocation7], %s1436_s20, %s1436_s20, %s1437_s21  }
  0x22   :  { %1428 = dma.done.wait [#allocation4], 1024  }
  0x23   :  { %1429 = vsyncadd [#allocation4], 4294966272 }
  0x24   :  { %1430 = dma.done.wait [#allocation7], 1024  }
  0x25   :  { %1431 = vsyncadd [#allocation7], 4294966272  ;;  %v1439_v0 = vmov 0.0   ;;  %vm1440_vm0 = vmmov 0   ;;  %v70_v1 = vld [vmem:[#allocation6 + $0x18] sm:$0xff]  ;;  %v69_v2 = vld [vmem:[#allocation6 + $0x10] sm:$0xff]  ;;  %v220_v21 = vlaneseq }
  0x26   :  { %1186 = vmatprep.subr.mxu1 %v1439_v0  ;;  %1194 = vmatprep.mubr.msk.f32.mxu1 %vm1440_vm0, %v1439_v0  ;;  %v1490_v3 = vld [vmem:[#allocation8 + $0x18] sm:$0xff]  ;;  %v1493_v4 = vld [vmem:[#allocation8 + $0x10] sm:$0xff]  ;;  %v68_v5 = vld [vmem:[#allocation6 + $0x8] sm:$0xff]  ;;  %vm78_vm1 = vcmask 261120   ;;  %s1442_s5 = smov 32   ;;  %s1443_s6 = smov [#allocation9]  }
  0x27   :  { %1166 = vmatprep.subr.mxu0 %v70_v1  ;;  %1187 = vmatpush3.msra.mxu1 %v1490_v3  ;;  %v59_v6 = vld [vmem:[#allocation3] sm:$0xff]  ;;  %v1497_v7 = vld [vmem:[#allocation8 + $0x8] sm:$0xff]  ;;  %v221_v22 = vand.u32 127, %v220_v21  ;;  %v61_v51 = vld [vmem:[#allocation3 + $0x10] sm:$0xff]  ;;  %s1077_s7 = sshll.u32 %s1443_s6, 4  ;;  %s1078_s7 = int_to_ptr.vmem [resolvable:$true] %s1077_s7 }
  0x28   :  { %1167 = vmatpush3.msra.mxu0 %v70_v1  ;;  %1188 = vmatprep.subr.mxu1 %v1439_v0  ;;  %v67_v8 = vld [vmem:[#allocation6] sm:$0xff]  ;;  %v60_v10 = vld [vmem:[#allocation3 + $0x8] sm:$0xff]  ;;  %v62_v52 = vld [vmem:[#allocation3 + $0x18] sm:$0xff]  ;;  %s1408_s8 = scalar_lea.vmem %s1078_s7, 1024  ;;  %p1413_p2 = scmp.lt.s32.totalorder %s1078_s7, %s1078_s7 }
  0x29   :  { %1168 = vmatprep.subr.mxu0 %v69_v2  ;;  %1189 = vmatpush3.msra.mxu1 %v1493_v4  ;;  %v1501_v9 = vld [vmem:[#allocation8] sm:$0xff]  ;;  %vm222_vm2 = vcmp.ge.s32.totalorder %v221_v22, 64  ;;  %vm223_vm3 = vcmp.lt.s32.totalorder %v221_v22, 96  ;;  %v64_v54 = vld [vmem:[#allocation3 + $0x28] sm:$0xff]  ;;  %v65_v55 = vld [vmem:[#allocation3 + $0x30] sm:$0xff]  ;;  %p1409_p1 = scmp.ne.s32.totalorder %s1078_s7, %s1408_s8  ;;  %p1414_p3 = scmp.lt.s32.totalorder %s1408_s8, %s1408_s8 }
  0x2a   :  { %1169 = vmatpush3.msra.mxu0 %v69_v2  ;;  %1190 = vmatprep.subr.mxu1 %v1439_v0  ;;  %v1531_v13 = vld [vmem:[%s1685_s3] ss:$0 sm:$0xff]  ;;  %vm1534_vm4 = vmand %vm222_vm2, %vm223_vm3  ;;  %s1441_s3 = smov 64   ;;  %v66_v56 = vld [vmem:[#allocation3 + $0x38] sm:$0xff] }
  0x2b   :  { %1170 = vmatprep.subr.mxu0 %v68_v5  ;;  %1174 = vmatprep.mubr.msk.f32.mxu0 %vm78_vm1, %v59_v6  ;;  %v63_v53 = vld [vmem:[#allocation3 + $0x20] sm:$0xff]  ;;  %p1415_p4 = por %p1414_p3, %p1413_p2 }
  0x2c   :  { %1171 = vmatpush3.msra.mxu0 %v68_v5  ;;  %1191 = vmatpush3.msra.mxu1 %v1497_v7 }
  0x2d   :  { %1172 = vmatprep.subr.mxu0 %v67_v8  ;;  %1192 = vmatprep.subr.mxu1 %v1439_v0  ;;  %p1416_p5 = pnand %p1415_p4, %p1409_p1 }
  0x2e   :  { %1173 = vmatpush3.msra.mxu0 %v67_v8  ;;  %1193 = vmatpush3.msra.mxu1 %v1501_v9 }
  0x2f   :  { %1175 = vmatmul.mubr.msk.f32.vlgmr.msra.gmra.mxu0 %vm78_vm1, %v60_v10  ;;  %1195 = vmatmul.mubr.f32.vlgmr.msra.gmra.mxu1 %v1439_v0 }
  0x30   :  { %1197 = vmatprep.subr.mxu1 %v1439_v0  ;;  %1205 = vmatprep.mubr.msk.f32.mxu1 %vm1440_vm0, %v1439_v0 }
  0x31   :  { %1198 = vmatpush3.msra.mxu1 %v1490_v3  ;;  %1208 = vmatprep.subr.mxu0 %v1439_v0 }
  0x32   :  { %1199 = vmatprep.subr.mxu1 %v1439_v0  ;;  %1209 = vmatpush3.msra.mxu0 %v1490_v3 }
  0x33   :  { %1200 = vmatpush3.msra.mxu1 %v1493_v4  ;;  %1210 = vmatprep.subr.mxu0 %v1439_v0 }
  0x34   :  { %1201 = vmatprep.subr.mxu1 %v1439_v0  ;;  %1211 = vmatpush3.msra.mxu0 %v1493_v4 }
  0x35   :  { %1202 = vmatpush3.msra.mxu1 %v1497_v7  ;;  %1212 = vmatprep.subr.mxu0 %v1439_v0 }
  0x36   :  { %1203 = vmatprep.subr.mxu1 %v1439_v0  ;;  %1213 = vmatpush3.msra.mxu0 %v1497_v7 }
  0x37   :  { %1204 = vmatpush3.msra.mxu1 %v1501_v9  ;;  %1214 = vmatprep.subr.mxu0 %v1439_v0 }
  0x38   :  { %1215 = vmatpush3.msra.mxu0 %v1501_v9  ;;  %1219 = vmatprep.subr.mxu1 %v1439_v0 }
  0x39   :  { %1230 = vmatprep.subr.mxu0 %v1439_v0  ;;  %1177 = vmatprep.mubr.msk.f32.mxu0 %vm78_vm1, %v61_v51 }
  0x3a   :  { %1178 = vmatmul.mubr.msk.f32.gmra.mxu0 %vm78_vm1, %v62_v52 }
  0x3b   :  { %1180 = vmatprep.mubr.msk.f32.mxu0 %vm78_vm1, %v63_v53 }
  0x3e   :  { %1181 = vmatmul.mubr.msk.f32.gmra.mxu0 %vm78_vm1, %v64_v54 }
  0x3f   :  { %1183 = vmatprep.mubr.msk.f32.mxu0 %vm78_vm1, %v65_v55 }
  0x42   :  { %1184 = vmatmul.mubr.msk.f32.gmra.mxu0 %vm78_vm1, %v66_v56 }
  0x43   :  { %1216 = vmatprep.mubr.msk.f32.mxu0 %vm1440_vm0, %v1439_v0 }
  0xef   :  { %v1176_v11 = vpop.f32.mrf.mxu0  ;;  %v295_v12 = vpop.f32.mrf.mxu1 }
  0xf0   :  { %v175_v36 = vadd.f32 %v1176_v11, %v1531_v13 }
  0xf1   :  { %v169_v14 = vpop.f32.mrf.mxu0  ;;  %v1196_v15 = vpop.f32.mrf.mxu1 }
  0xf2   :  { %v170_v16 = vadd.f32 %v1531_v13, %v169_v14 }
  0xf4   :  { %v299_v17 = vadd.f32 %v295_v12, %v170_v16 }
  0xf6   :  { %v1099_v18 = vmul.f32 -1.442695, %v299_v17 }
  0xf8   :  { %1284 = vpow2.f32 %v1099_v18 }
  0xf9   :  { %1286 = vtanh.f32 %v299_v17 }
  0xfa   :  { %v1179_v61 = vpop.f32.mrf.mxu0 }
  0xfc   :  { %v179_v62 = vpop.f32.mrf.mxu0 }
  0xfd   :  { %v180_v6 = vadd.f32 %v1531_v13, %v179_v62 }
  0xfe   :  { %v1583_v63 = vpop.f32.mrf.mxu0 }
 0x100   :  { %v1585_v1 = vpop.f32.mrf.mxu0 }
 0x102   :  { %v1587_v2 = vpop.f32.mrf.mxu0 }
 0x104   :  { %v1589_v5 = vpop.f32.mrf.mxu0 }
 0x105   :  { %v1285_v19 = vpop.eup %1284 }
 0x106   :  { %v304_v20 = vadd.f32 1.0, %v1285_v19  ;;  %v1287_v24 = vpop.eup %1286 }
 0x108   :  { %1288 = vrcp.f32 %v304_v20 }
 0x115   :  { %v1289_v25 = vpop.eup %1288 }
 0x116   :  { %v307_v26 = vsel %vm1534_vm4, %v1287_v24, %v1289_v25 }
 0x117   :  { %310 = vrot.lane.b32.xlu0 %v307_v26, %s1441_s3  ;;  %v308_v29 = vmul.f32 0.0, %v307_v26 }
 0x189   :  { %v311_v27 = vpop.permute.xlu0 %310 }
 0x18a   :  { %v313_v28 = vmul.f32 %v311_v27, %v307_v26 }
 0x18c   :  { %315 = vrot.lane.b32.xlu0 %v313_v28, %s1442_s5 }
 0x1fe   :  { %v316_v30 = vpop.permute.xlu0 %315 }
 0x1ff   :  { %v318_v31 = vadd.f32 %v316_v30, %v308_v29  ;;  %v185_v29 = vadd.f32 %v1179_v61, %v1531_v13 }
 0x201   :  { %1290 = vtanh.f32 %v318_v31 }
 0x20e   :  { %v1291_v32 = vpop.eup %1290 }
 0x20f   :  { %321 = vrot.lane.b32.xlu1 %v1291_v32, %s1441_s3 }
 0x281   :  { %v322_v33 = vpop.permute.xlu1 %321 }
 0x282   :  { %v324_v34 = vmul.f32 %v322_v33, %v307_v26 }
 0x284   :  { %326 = vrot.lane.b32.xlu1 %v324_v34, %s1442_s5 }
 0x2f6   :  { %v327_v35 = vpop.permute.xlu1 %326 }
 0x2f7   :  { %329 = vst.msk [vmem:[#allocation9] sm:$0xff] %vm78_vm1, %v327_v35  ;;  %1206 = vmatmul.mubr.msk.f32.vlgmr.msra.gmra.mxu1 %vm78_vm1, %v327_v35 }
 0x2f8   :  { %1220 = vmatpush3.msra.mxu1 %v1490_v3  ;;  %1227 = vmatprep.mubr.msk.f32.mxu1 %vm1440_vm0, %v1439_v0 }
 0x2f9   :  { %1221 = vmatprep.subr.mxu1 %v1439_v0 }
 0x2fa   :  { %1222 = vmatpush3.msra.mxu1 %v1493_v4 }
 0x2fb   :  { %1223 = vmatprep.subr.mxu1 %v1439_v0 }
 0x2fc   :  { %1224 = vmatpush3.msra.mxu1 %v1497_v7 }
 0x2fd   :  { %1225 = vmatprep.subr.mxu1 %v1439_v0 }
 0x2fe   :  { %1226 = vmatpush3.msra.mxu1 %v1501_v9 }
 0x2ff   :  { %1241 = vmatprep.subr.mxu1 %v1439_v0 }
 0x3b7   :  { %v400_v37 = vpop.f32.mrf.mxu1 }
 0x3b8   :  { %v404_v38 = vadd.f32 %v400_v37, %v175_v36 }
 0x3b9   :  { %v1207_v39 = vpop.f32.mrf.mxu1 }
 0x3ba   :  { %v1101_v40 = vmul.f32 -1.442695, %v404_v38 }
 0x3bc   :  { %1292 = vpow2.f32 %v1101_v40 }
 0x3bd   :  { %1294 = vtanh.f32 %v404_v38 }
 0x3c9   :  { %v1293_v41 = vpop.eup %1292 }
 0x3ca   :  { %v409_v42 = vadd.f32 1.0, %v1293_v41  ;;  %v1295_v43 = vpop.eup %1294 }
 0x3cc   :  { %1296 = vrcp.f32 %v409_v42 }
 0x3d9   :  { %v1297_v44 = vpop.eup %1296 }
 0x3da   :  { %v412_v45 = vsel %vm1534_vm4, %v1295_v43, %v1297_v44 }
 0x3db   :  { %415 = vrot.lane.b32.xlu0 %v412_v45, %s1441_s3  ;;  %v413_v48 = vmul.f32 %v412_v45, %v318_v31 }
 0x44d   :  { %v416_v46 = vpop.permute.xlu0 %415 }
 0x44e   :  { %v418_v47 = vmul.f32 %v416_v46, %v412_v45 }
 0x450   :  { %420 = vrot.lane.b32.xlu1 %v418_v47, %s1442_s5 }
 0x4c2   :  { %v421_v49 = vpop.permute.xlu1 %420 }
 0x4c3   :  { %v423_v50 = vadd.f32 %v421_v49, %v413_v48  ;;  %v190_v48 = vadd.f32 %v1531_v13, %v1585_v1 }
 0x4c5   :  { %1298 = vtanh.f32 %v423_v50 }
 0x4d2   :  { %v1299_v57 = vpop.eup %1298 }
 0x4d3   :  { %426 = vrot.lane.b32.xlu0 %v1299_v57, %s1441_s3 }
 0x545   :  { %v427_v58 = vpop.permute.xlu0 %426 }
 0x546   :  { %v429_v59 = vmul.f32 %v427_v58, %v412_v45 }
 0x548   :  { %431 = vrot.lane.b32.xlu1 %v429_v59, %s1442_s5 }
 0x5ba   :  { %v432_v60 = vpop.permute.xlu1 %431 }
 0x5bb   :  { %435 = vst.msk [vmem:[#allocation9 + $0x8] sm:$0xff] %vm78_vm1, %v432_v60  ;;  %1217 = vmatmul.mubr.msk.f32.vlgmr.msra.gmra.mxu0 %vm78_vm1, %v432_v60 }
 0x5bc   :  { %1231 = vmatpush3.msra.mxu0 %v1490_v3  ;;  %1238 = vmatprep.mubr.msk.f32.mxu0 %vm1440_vm0, %v1439_v0 }
 0x5bd   :  { %1232 = vmatprep.subr.mxu0 %v1439_v0 }
 0x5be   :  { %1233 = vmatpush3.msra.mxu0 %v1493_v4 }
 0x5bf   :  { %1234 = vmatprep.subr.mxu0 %v1439_v0 }
 0x5c0   :  { %1235 = vmatpush3.msra.mxu0 %v1497_v7 }
 0x5c1   :  { %1236 = vmatprep.subr.mxu0 %v1439_v0 }
 0x5c2   :  { %1237 = vmatpush3.msra.mxu0 %v1501_v9 }
 0x5c3   :  { %1252 = vmatprep.subr.mxu0 %v1439_v0 }
 0x67b   :  { %v506_v8 = vpop.f32.mrf.mxu0 }
 0x67c   :  { %v510_v10 = vadd.f32 %v506_v8, %v180_v6 }
 0x67d   :  { %v1218_v11 = vpop.f32.mrf.mxu0 }
 0x67e   :  { %v1103_v12 = vmul.f32 -1.442695, %v510_v10  ;;  %v195_v11 = vadd.f32 %v1583_v63, %v1531_v13 }
 0x680   :  { %1300 = vpow2.f32 %v1103_v12 }
 0x681   :  { %1302 = vtanh.f32 %v510_v10 }
 0x68d   :  { %v1301_v14 = vpop.eup %1300 }
 0x68e   :  { %v515_v15 = vadd.f32 1.0, %v1301_v14  ;;  %v1303_v16 = vpop.eup %1302 }
 0x690   :  { %1304 = vrcp.f32 %v515_v15 }
 0x69d   :  { %v1305_v17 = vpop.eup %1304 }
 0x69e   :  { %v518_v18 = vsel %vm1534_vm4, %v1303_v16, %v1305_v17 }
 0x69f   :  { %521 = vrot.lane.b32.xlu0 %v518_v18, %s1441_s3  ;;  %v519_v21 = vmul.f32 %v518_v18, %v423_v50 }
 0x711   :  { %v522_v19 = vpop.permute.xlu0 %521 }
 0x712   :  { %v524_v20 = vmul.f32 %v522_v19, %v518_v18 }
 0x714   :  { %526 = vrot.lane.b32.xlu1 %v524_v20, %s1442_s5 }
 0x786   :  { %v527_v22 = vpop.permute.xlu1 %526 }
 0x787   :  { %v529_v24 = vadd.f32 %v527_v22, %v519_v21 }
 0x789   :  { %1306 = vtanh.f32 %v529_v24 }
 0x796   :  { %v1307_v25 = vpop.eup %1306 }
 0x797   :  { %532 = vrot.lane.b32.xlu0 %v1307_v25, %s1441_s3 }
 0x809   :  { %v533_v26 = vpop.permute.xlu0 %532 }
 0x80a   :  { %v535_v27 = vmul.f32 %v533_v26, %v518_v18  ;;  %v200_v26 = vadd.f32 %v1531_v13, %v1589_v5 }
 0x80c   :  { %537 = vrot.lane.b32.xlu1 %v535_v27, %s1442_s5 }
 0x87e   :  { %v538_v28 = vpop.permute.xlu1 %537 }
 0x87f   :  { %541 = vst.msk [vmem:[#allocation9 + $0x10] sm:$0xff] %vm78_vm1, %v538_v28  ;;  %1228 = vmatmul.mubr.msk.f32.vlgmr.msra.gmra.mxu1 %vm78_vm1, %v538_v28 }
 0x880   :  { %1242 = vmatpush3.msra.mxu1 %v1490_v3  ;;  %1249 = vmatprep.mubr.msk.f32.mxu1 %vm1440_vm0, %v1439_v0 }
 0x881   :  { %1243 = vmatprep.subr.mxu1 %v1439_v0 }
 0x882   :  { %1244 = vmatpush3.msra.mxu1 %v1493_v4 }
 0x883   :  { %1245 = vmatprep.subr.mxu1 %v1439_v0 }
 0x884   :  { %1246 = vmatpush3.msra.mxu1 %v1497_v7 }
 0x885   :  { %1247 = vmatprep.subr.mxu1 %v1439_v0 }
 0x886   :  { %1248 = vmatpush3.msra.mxu1 %v1501_v9 }
 0x887   :  { %1263 = vmatprep.subr.mxu1 %v1439_v0 }
 0x93f   :  { %v612_v30 = vpop.f32.mrf.mxu1 }
 0x940   :  { %v616_v31 = vadd.f32 %v612_v30, %v185_v29 }
 0x941   :  { %v1229_v32 = vpop.f32.mrf.mxu1 }
 0x942   :  { %v1105_v33 = vmul.f32 -1.442695, %v616_v31 }
 0x944   :  { %1308 = vpow2.f32 %v1105_v33 }
 0x945   :  { %1310 = vtanh.f32 %v616_v31 }
 0x951   :  { %v1309_v34 = vpop.eup %1308 }
 0x952   :  { %v621_v35 = vadd.f32 1.0, %v1309_v34  ;;  %v1311_v36 = vpop.eup %1310 }
 0x954   :  { %1312 = vrcp.f32 %v621_v35 }
 0x961   :  { %v1313_v37 = vpop.eup %1312 }
 0x962   :  { %v624_v38 = vsel %vm1534_vm4, %v1311_v36, %v1313_v37 }
 0x963   :  { %627 = vrot.lane.b32.xlu0 %v624_v38, %s1441_s3  ;;  %v625_v41 = vmul.f32 %v624_v38, %v529_v24 }
 0x9d5   :  { %v628_v39 = vpop.permute.xlu0 %627 }
 0x9d6   :  { %v630_v40 = vmul.f32 %v628_v39, %v624_v38 }
 0x9d8   :  { %632 = vrot.lane.b32.xlu1 %v630_v40, %s1442_s5 }
 0xa4a   :  { %v633_v42 = vpop.permute.xlu1 %632 }
 0xa4b   :  { %v635_v43 = vadd.f32 %v633_v42, %v625_v41 }
 0xa4d   :  { %1314 = vtanh.f32 %v635_v43 }
 0xa5a   :  { %v1315_v44 = vpop.eup %1314 }
 0xa5b   :  { %638 = vrot.lane.b32.xlu0 %v1315_v44, %s1441_s3  ;;  %v205_v44 = vadd.f32 %v1587_v2, %v1531_v13 }
 0xacd   :  { %v639_v45 = vpop.permute.xlu0 %638 }
 0xace   :  { %v641_v46 = vmul.f32 %v639_v45, %v624_v38 }
 0xad0   :  { %643 = vrot.lane.b32.xlu1 %v641_v46, %s1442_s5 }
 0xb42   :  { %v644_v47 = vpop.permute.xlu1 %643 }
 0xb43   :  { %647 = vst.msk [vmem:[#allocation9 + $0x18] sm:$0xff] %vm78_vm1, %v644_v47  ;;  %1239 = vmatmul.mubr.msk.f32.vlgmr.msra.gmra.mxu0 %vm78_vm1, %v644_v47 }
 0xb44   :  { %1253 = vmatpush3.msra.mxu0 %v1490_v3  ;;  %1260 = vmatprep.mubr.msk.f32.mxu0 %vm1440_vm0, %v1439_v0 }
 0xb45   :  { %1254 = vmatprep.subr.mxu0 %v1439_v0 }
 0xb46   :  { %1255 = vmatpush3.msra.mxu0 %v1493_v4 }
 0xb47   :  { %1256 = vmatprep.subr.mxu0 %v1439_v0 }
 0xb48   :  { %1257 = vmatpush3.msra.mxu0 %v1497_v7 }
 0xb49   :  { %1258 = vmatprep.subr.mxu0 %v1439_v0 }
 0xb4a   :  { %1259 = vmatpush3.msra.mxu0 %v1501_v9 }
 0xc03   :  { %v718_v49 = vpop.f32.mrf.mxu0 }
 0xc04   :  { %v722_v50 = vadd.f32 %v718_v49, %v190_v48 }
 0xc05   :  { %v1240_v51 = vpop.f32.mrf.mxu0 }
 0xc06   :  { %v1107_v52 = vmul.f32 -1.442695, %v722_v50 }
 0xc08   :  { %1316 = vpow2.f32 %v1107_v52 }
 0xc09   :  { %1318 = vtanh.f32 %v722_v50 }
 0xc15   :  { %v1317_v53 = vpop.eup %1316 }
 0xc16   :  { %v727_v54 = vadd.f32 1.0, %v1317_v53  ;;  %v1319_v55 = vpop.eup %1318 }
 0xc18   :  { %1320 = vrcp.f32 %v727_v54 }
 0xc25   :  { %v1321_v56 = vpop.eup %1320 }
 0xc26   :  { %v730_v57 = vsel %vm1534_vm4, %v1319_v55, %v1321_v56 }
 0xc27   :  { %733 = vrot.lane.b32.xlu0 %v730_v57, %s1441_s3  ;;  %v731_v60 = vmul.f32 %v730_v57, %v635_v43 }
 0xc99   :  { %v734_v58 = vpop.permute.xlu0 %733 }
 0xc9a   :  { %v736_v59 = vmul.f32 %v734_v58, %v730_v57 }
 0xc9c   :  { %738 = vrot.lane.b32.xlu1 %v736_v59, %s1442_s5 }
 0xd0e   :  { %v739_v61 = vpop.permute.xlu1 %738 }
 0xd0f   :  { %v741_v62 = vadd.f32 %v739_v61, %v731_v60 }
 0xd11   :  { %1322 = vtanh.f32 %v741_v62 }
 0xd1e   :  { %v1323_v1 = vpop.eup %1322 }
 0xd1f   :  { %744 = vrot.lane.b32.xlu0 %v1323_v1, %s1441_s3 }
 0xd91   :  { %v745_v6 = vpop.permute.xlu0 %744 }
 0xd92   :  { %v747_v8 = vmul.f32 %v745_v6, %v730_v57 }
 0xd94   :  { %749 = vrot.lane.b32.xlu1 %v747_v8, %s1442_s5 }
 0xe06   :  { %v750_v10 = vpop.permute.xlu1 %749 }
 0xe07   :  { %753 = vst.msk [vmem:[#allocation9 + $0x20] sm:$0xff] %vm78_vm1, %v750_v10  ;;  %1250 = vmatmul.mubr.msk.f32.vlgmr.msra.gmra.mxu1 %vm78_vm1, %v750_v10 }
 0xe08   :  { %1264 = vmatpush3.msra.mxu1 %v1490_v3  ;;  %1271 = vmatprep.mubr.msk.f32.mxu1 %vm1440_vm0, %v1439_v0 }
 0xe09   :  { %1265 = vmatprep.subr.mxu1 %v1439_v0 }
 0xe0a   :  { %1266 = vmatpush3.msra.mxu1 %v1493_v4 }
 0xe0b   :  { %1267 = vmatprep.subr.mxu1 %v1439_v0 }
 0xe0c   :  { %1268 = vmatpush3.msra.mxu1 %v1497_v7 }
 0xe0d   :  { %1269 = vmatprep.subr.mxu1 %v1439_v0 }
 0xe0e   :  { %1270 = vmatpush3.msra.mxu1 %v1501_v9 }
 0xec7   :  { %v824_v12 = vpop.f32.mrf.mxu1 }
 0xec8   :  { %v828_v3 = vadd.f32 %v824_v12, %v195_v11 }
 0xec9   :  { %v1251_v14 = vpop.f32.mrf.mxu1 }
 0xeca   :  { %v1109_v15 = vmul.f32 -1.442695, %v828_v3 }
 0xecc   :  { %1324 = vpow2.f32 %v1109_v15 }
 0xecd   :  { %1326 = vtanh.f32 %v828_v3 }
 0xed9   :  { %v1325_v16 = vpop.eup %1324 }
 0xeda   :  { %v833_v17 = vadd.f32 1.0, %v1325_v16  ;;  %v1327_v4 = vpop.eup %1326 }
 0xedc   :  { %1328 = vrcp.f32 %v833_v17 }
 0xee9   :  { %v1329_v18 = vpop.eup %1328 }
 0xeea   :  { %v836_v7 = vsel %vm1534_vm4, %v1327_v4, %v1329_v18 }
 0xeeb   :  { %839 = vrot.lane.b32.xlu0 %v836_v7, %s1441_s3  ;;  %v837_v63 = vmul.f32 %v836_v7, %v741_v62 }
 0xf5d   :  { %v840_v0 = vpop.permute.xlu0 %839 }
 0xf5e   :  { %v842_v9 = vmul.f32 %v840_v0, %v836_v7 }
 0xf60   :  { %844 = vrot.lane.b32.xlu1 %v842_v9, %s1442_s5 }
 0xfd2   :  { %v845_v19 = vpop.permute.xlu1 %844 }
 0xfd3   :  { %v847_v20 = vadd.f32 %v845_v19, %v837_v63 }
 0xfd5   :  { %1330 = vtanh.f32 %v847_v20 }
 0xfe2   :  { %v1331_v21 = vpop.eup %1330 }
 0xfe3   :  { %850 = vrot.lane.b32.xlu0 %v1331_v21, %s1441_s3 }
0x1055   :  { %v851_v22 = vpop.permute.xlu0 %850 }
0x1056   :  { %v853_v24 = vmul.f32 %v851_v22, %v836_v7 }
0x1058   :  { %855 = vrot.lane.b32.xlu1 %v853_v24, %s1442_s5 }
0x10ca   :  { %v856_v25 = vpop.permute.xlu1 %855 }
0x10cb   :  { %859 = vst.msk [vmem:[#allocation9 + $0x28] sm:$0xff] %vm78_vm1, %v856_v25  ;;  %1261 = vmatmul.mubr.msk.f32.vlgmr.msra.gmra.mxu0 %vm78_vm1, %v856_v25 }
0x118b   :  { %v930_v27 = vpop.f32.mrf.mxu0 }
0x118c   :  { %v934_v28 = vadd.f32 %v930_v27, %v200_v26 }
0x118d   :  { %v1262_v29 = vpop.f32.mrf.mxu0 }
0x118e   :  { %v1111_v30 = vmul.f32 -1.442695, %v934_v28 }
0x1190   :  { %1332 = vpow2.f32 %v1111_v30 }
0x1191   :  { %1334 = vtanh.f32 %v934_v28 }
0x119d   :  { %v1333_v31 = vpop.eup %1332 }
0x119e   :  { %v939_v32 = vadd.f32 1.0, %v1333_v31  ;;  %v1335_v33 = vpop.eup %1334 }
0x11a0   :  { %1336 = vrcp.f32 %v939_v32 }
0x11ad   :  { %v1337_v34 = vpop.eup %1336 }
0x11ae   :  { %v942_v35 = vsel %vm1534_vm4, %v1335_v33, %v1337_v34 }
0x11af   :  { %945 = vrot.lane.b32.xlu0 %v942_v35, %s1441_s3  ;;  %v943_v5 = vmul.f32 %v942_v35, %v847_v20 }
0x1221   :  { %v946_v36 = vpop.permute.xlu0 %945 }
0x1222   :  { %v948_v37 = vmul.f32 %v946_v36, %v942_v35 }
0x1224   :  { %950 = vrot.lane.b32.xlu1 %v948_v37, %s1442_s5 }
0x1296   :  { %v951_v38 = vpop.permute.xlu1 %950 }
0x1297   :  { %v953_v39 = vadd.f32 %v951_v38, %v943_v5 }
0x1299   :  { %1338 = vtanh.f32 %v953_v39 }
0x12a6   :  { %v1339_v40 = vpop.eup %1338 }
0x12a7   :  { %956 = vrot.lane.b32.xlu0 %v1339_v40, %s1441_s3 }
0x1319   :  { %v957_v41 = vpop.permute.xlu0 %956 }
0x131a   :  { %v959_v42 = vmul.f32 %v957_v41, %v942_v35 }
0x131c   :  { %961 = vrot.lane.b32.xlu1 %v959_v42, %s1442_s5 }
0x138e   :  { %v962_v43 = vpop.permute.xlu1 %961 }
0x138f   :  { %965 = vst.msk [vmem:[#allocation9 + $0x30] sm:$0xff] %vm78_vm1, %v962_v43  ;;  %1272 = vmatmul.mubr.msk.f32.vlgmr.msra.gmra.mxu1 %vm78_vm1, %v962_v43 }
0x144f   :  { %v1036_v45 = vpop.f32.mrf.mxu1 }
0x1450   :  { %v1040_v46 = vadd.f32 %v1036_v45, %v205_v44 }
0x1451   :  { %v1273_v47 = vpop.f32.mrf.mxu1 }
0x1452   :  { %v1113_v48 = vmul.f32 -1.442695, %v1040_v46 }
0x1454   :  { %1340 = vpow2.f32 %v1113_v48 }
0x1455   :  { %1342 = vtanh.f32 %v1040_v46 }
0x1461   :  { %v1341_v49 = vpop.eup %1340 }
0x1462   :  { %v1045_v50 = vadd.f32 1.0, %v1341_v49  ;;  %v1343_v51 = vpop.eup %1342 }
0x1464   :  { %1344 = vrcp.f32 %v1045_v50 }
0x1471   :  { %v1345_v52 = vpop.eup %1344 }
0x1472   :  { %v1048_v53 = vsel %vm1534_vm4, %v1343_v51, %v1345_v52 }
0x1473   :  { %1051 = vrot.lane.b32.xlu0 %v1048_v53, %s1441_s3  ;;  %v1049_v13 = vmul.f32 %v1048_v53, %v953_v39 }
0x14e5   :  { %v1052_v54 = vpop.permute.xlu0 %1051 }
0x14e6   :  { %v1054_v55 = vmul.f32 %v1052_v54, %v1048_v53 }
0x14e8   :  { %1056 = vrot.lane.b32.xlu1 %v1054_v55, %s1442_s5 }
0x155a   :  { %v1057_v2 = vpop.permute.xlu1 %1056 }
0x155b   :  { %v1059_v56 = vadd.f32 %v1057_v2, %v1049_v13 }
0x155d   :  { %1346 = vtanh.f32 %v1059_v56 }
0x156a   :  { %v1347_v57 = vpop.eup %1346 }
0x156b   :  { %1062 = vrot.lane.b32.xlu0 %v1347_v57, %s1441_s3 }
0x15dd   :  { %v1063_v58 = vpop.permute.xlu0 %1062 }
0x15de   :  { %v1065_v59 = vmul.f32 %v1063_v58, %v1048_v53 }
0x15e0   :  { %1067 = vrot.lane.b32.xlu1 %v1065_v59, %s1442_s5 }
0x1652   :  { %v1068_v23 = vpop.permute.xlu1 %1067 }
0x1653   :  { %1071 = vst.msk [vmem:[#allocation9 + $0x38] sm:$0xff] %vm78_vm1, %v1068_v23 }
0x1654   :  { %1419 = shalt.err (!%p1416_p5)
}
0x1655   :  { %1083 = dma.vmem_to_hbm [thread:$0]  %s1078_s7, 1024, %s1686_s4, [#allocation5], %s1436_s20, %s1436_s20, %s1437_s21  }
0x1656   :  { %1432 = dma.done.wait [#allocation5], 1024  }
0x1657   :  { %1433 = vsyncadd [#allocation5], 4294966272 }
0x1658   :  { %1087 = vsyncpa [#allocation4], 1 }
0x1659   :  { %1088 = vsyncpa [#allocation7], 1 }
0x165a   :  { %1089 = vsyncpa [#allocation5], 1 }

</bundles_post_ra>
